<compile_context>
chip_gen: v7x
topology: tpu7x:2x2x1
jax: 0.10.0
libtpu: 0.0.40
codegen_flags: <defaults>
</compile_context>

<pallas_src>
import functools
import math

import numpy as np
import jax
import jax.numpy as jnp
from jax.experimental import pallas as pl
from jax.experimental.pallas import tpu as pltpu


# ----------------------- mel filterbank (librosa-compatible) -----------------------

def _hz_to_mel(freqs):
    freqs = np.asarray(freqs, dtype=np.float64)
    f_sp = 200.0 / 3.0
    mels = freqs / f_sp
    min_log_hz = 1000.0
    min_log_mel = min_log_hz / f_sp
    logstep = np.log(6.4) / 27.0
    log_t = freqs >= min_log_hz
    safe = np.maximum(freqs, min_log_hz)
    return np.where(log_t, min_log_mel + np.log(safe / min_log_hz) / logstep, mels)


def _mel_to_hz(mels):
    mels = np.asarray(mels, dtype=np.float64)
    f_sp = 200.0 / 3.0
    freqs = f_sp * mels
    min_log_hz = 1000.0
    min_log_mel = min_log_hz / f_sp
    logstep = np.log(6.4) / 27.0
    log_t = mels >= min_log_mel
    return np.where(log_t, min_log_hz * np.exp(logstep * (mels - min_log_mel)), freqs)


def _mel_filterbank(sr, n_fft, n_mels):
    """librosa.filters.mel(sr, n_fft, n_mels) with default slaney scale/norm."""
    n_freq = 1 + n_fft // 2
    fmin, fmax = 0.0, sr / 2.0
    fftfreqs = np.linspace(0.0, sr / 2.0, n_freq)
    mel_f = _mel_to_hz(np.linspace(_hz_to_mel(fmin), _hz_to_mel(fmax), n_mels + 2))
    fdiff = np.diff(mel_f)
    ramps = mel_f[:, None] - fftfreqs[None, :]
    lower = -ramps[:-2] / fdiff[:-1, None]
    upper = ramps[2:] / fdiff[1:, None]
    weights = np.maximum(0.0, np.minimum(lower, upper))
    enorm = 2.0 / (mel_f[2:n_mels + 2] - mel_f[:n_mels])
    weights = weights * enorm[:, None]
    return weights.astype(np.float32)                      # [n_mels, n_freq]


def _hann_periodic(n):
    return (0.5 - 0.5 * np.cos(2.0 * np.pi * np.arange(n) / n)).astype(np.float32)


# ------------------------------- Pallas kernel -------------------------------------

def _exp_matmul_abs_kernel(x_ref, w_ref, o_ref):
    """Fused: exp(log-mel) -> bf16 MXU matmul (f32 acc) -> |.|.

    x_ref: (tm, n_mels)   flattened (B*T) rows of log-mel, f32 (no K padding)
    w_ref: (n_mels, n_freq) pinv(mel_basis)^T, bf16
    o_ref: (tm, n_freq)   |linear magnitude spectrogram|, f32
    """
    x = jnp.exp(x_ref[...])                                 # f32 elementwise (EUP)
    spec = jnp.dot(x.astype(jnp.bfloat16), w_ref[...],
                   preferred_element_type=jnp.float32)      # MXU, f32 accumulation
    o_ref[...] = jnp.abs(spec)


# ------------------------------ Griffin-Lim (JAX) ----------------------------------

def _build_griffin_lim(T, *, n_fft, hop, n_iter, momentum, window_np):
    """Griffin-Lim for one item, S: [T, F] magnitudes (time-major).

    Framing / overlap-add are expressed as reshapes + static slices + shifted
    pad-adds (no gather, no scatter-add), exploiting n_fft == 4*hop and
    n_fft//2 == 2*hop.
    """
    assert n_fft % hop == 0 and (n_fft // 2) % hop == 0
    cpf = n_fft // hop                 # chunks per frame (4)
    pad_chunks = (n_fft // 2) // hop   # center padding in chunks (2)
    length = hop * (T - 1)
    n_chunks = T - 1 + cpf             # chunks in the padded signal (T+3)

    window = jnp.asarray(window_np)                         # (n_fft,)

    # window-sum-square envelope (trace-time constant), chunked
    env = np.zeros(hop * n_chunks, np.float64)
    wsq = window_np.astype(np.float64) ** 2
    for t in range(T):
        env[t * hop:t * hop + n_fft] += wsq
    tiny64 = float(np.finfo(np.float32).tiny)
    inv_env = np.where(env > tiny64, 1.0 / np.maximum(env, tiny64), 0.0)
    inv_env_chunks = jnp.asarray(inv_env.reshape(n_chunks, hop), jnp.float32)

    def frame(y):                                           # [length] -> (T, n_fft)
        chunks = jnp.concatenate(
            [jnp.zeros((pad_chunks, hop), y.dtype),
             y.reshape(T - 1, hop),
             jnp.zeros((pad_chunks, hop), y.dtype)], axis=0)           # (T+3, hop)
        return jnp.concatenate([chunks[k:k + T] for k in range(cpf)], axis=1)

    def stft(y):                                            # [length] -> (T, F) c64
        return jnp.fft.rfft(frame(y) * window, axis=-1)

    def overlap_add(frames):                                # (T, n_fft) -> (T+3, hop)
        f = frames.reshape(T, cpf, hop)
        out = jnp.zeros((n_chunks, hop), frames.dtype)
        for k in range(cpf):                                # 4 shifted pad+adds
            out = out + jnp.pad(f[:, k, :], ((k, cpf - 1 - k), (0, 0)))
        return out

    def istft(spec):                                        # (T, F) c64 -> [length]
        frames = jnp.fft.irfft(spec, n=n_fft, axis=-1) * window
        y = overlap_add(frames) * inv_env_chunks
        return y[pad_chunks:pad_chunks + (T - 1)].reshape(length)

    alpha = momentum / (1.0 + momentum)
    tiny = jnp.float32(np.finfo(np.float32).tiny)

    def griffin_lim(S, key):
        theta = (2.0 * np.pi) * jax.random.uniform(key, S.shape, jnp.float32)
        angles = jax.lax.complex(jnp.cos(theta), jnp.sin(theta))       # c64
        rebuilt = jnp.zeros(S.shape, jnp.complex64)

        def body(_, carry):
            angles, rebuilt = carry
            tprev = rebuilt
            inverse = istft(S * angles)
            rebuilt = stft(inverse)
            angles = rebuilt - alpha * tprev
            angles = angles / (jnp.abs(angles) + tiny)
            return angles, rebuilt

        angles, _ = jax.lax.fori_loop(0, n_iter, body, (angles, rebuilt))
        return istft(S * angles)

    return griffin_lim


# -------------------------------- MelToAudio ---------------------------------------

def make_mel_to_audio(n_mels=80, n_fft=1024, hop_length=256, sample_rate=16000,
                      n_iter=32, momentum=0.99):
    n_freq = n_fft // 2 + 1
    mel_basis = _mel_filterbank(sample_rate, n_fft, n_mels)       # [n_mels, n_freq]
    mel_inverse = np.linalg.pinv(mel_basis)                       # [n_freq, n_mels]

    # pinv(mel_basis)^T as (K=n_mels, N=n_freq); bf16 MXU operand.
    # (Keep f32 + f32 matmul if reconstruction fidelity vs the f32 reference matters.)
    w_bf16 = jnp.asarray(mel_inverse.T, jnp.bfloat16)             # (80, 513)

    window_np = _hann_periodic(n_fft)

    def forward(mel_spec, key):
        """mel_spec: [B, n_mels, T] -> audio [B, hop_length*(T-1)]."""
        B, M, T = mel_spec.shape

        # ---- Pallas: magnitude linear spectrogram over folded M = B*T rows ----
        m_total = B * T
        x_flat = jnp.transpose(mel_spec, (0, 2, 1)).astype(jnp.float32)
        x_flat = x_flat.reshape(m_total, M)                       # (B*T, 80)

        # Tile the folded M axis only when it is large; tm stays a multiple of 8
        # (and of 128 when not the full extent) to satisfy block constraints.
        tm = m_total if m_total <= 1024 else 512
        grid = (pl.cdiv(m_total, tm),)

        mag = pl.pallas_call(
            _exp_matmul_abs_kernel,
            out_shape=jax.ShapeDtypeStruct((m_total, n_freq), jnp.float32),
            grid=grid,
            in_specs=[
                pl.BlockSpec((tm, M), lambda j: (j, 0)),          # K=80 = full dim
                pl.BlockSpec((M, n_freq), lambda j: (0, 0)),      # whole W each step
            ],
            out_specs=pl.BlockSpec((tm, n_freq), lambda j: (j, 0)),
            compiler_params=pltpu.CompilerParams(
                dimension_semantics=("parallel",),
                vmem_limit_bytes=32 * 1024 * 1024),
        )(x_flat, w_bf16)
        S = mag.reshape(B, T, n_freq)                             # free reshape

        # ---- Griffin-Lim (vmapped over batch) ----
        gl = _build_griffin_lim(T, n_fft=n_fft, hop=hop_length,
                                n_iter=n_iter, momentum=momentum,
                                window_np=window_np)
        keys = jax.random.split(key, B)
        audio = jax.vmap(gl)(S, keys)                             # [B, hop*(T-1)]
        # All batch items have identical length -> already the "padded" batch.
        return audio

    return forward


# ----------------------------------- main ------------------------------------------

if __name__ == "__main__":
    n_mels, n_fft, hop_length, sample_rate = 80, 1024, 256, 16000
    B, T = 2, 16

    key = jax.random.PRNGKey(0)
    k_mel, k_gl = jax.random.split(key)
    # Small deterministic log-mel input.
    mel_spec = 0.5 * jax.random.normal(k_mel, (B, n_mels, T), jnp.float32) - 1.0

    mel_to_audio = jax.jit(make_mel_to_audio(
        n_mels=n_mels, n_fft=n_fft, hop_length=hop_length,
        sample_rate=sample_rate, n_iter=32))

    audio = mel_to_audio(mel_spec, k_gl)
    jax.block_until_ready(audio)

    assert audio.shape == (B, hop_length * (T - 1)), audio.shape
    assert bool(jnp.all(jnp.isfinite(audio)))
    print("KERNEL_OK")
</pallas_src>

<mosaic_0001>
module attributes {stable_mosaic.version = 11 : i64} {
  func.func @_exp_matmul_abs_kernel(%arg0: i32, %arg1: memref<32x80xf32, #tpu.memory_space<vmem>>, %arg2: memref<80x513xbf16, #tpu.memory_space<vmem>>, %arg3: memref<32x513xf32, #tpu.memory_space<vmem>>) attributes {dimension_semantics = [#tpu.dimension_semantics<parallel>], iteration_bounds = array<i64: 1>, scalar_prefetch = 0 : i64, scratch_operands = 0 : i64, tpu.core_type = #tpu.core_type<tc>, window_params = [{transform_indices = @transform_0, window_bounds = array<i64: 32, 80>}, {pipeline_mode = #tpu.pipeline_mode<synchronous>, transform_indices = @transform_1, window_bounds = array<i64: 80, 513>}, {transform_indices = @transform_2, window_bounds = array<i64: 32, 513>}]} {
    %c0 = arith.constant 0 : index
    %c0_0 = arith.constant 0 : index
    %0 = vector.load %arg1[%c0, %c0_0] : memref<32x80xf32, #tpu.memory_space<vmem>>, vector<32x80xf32>
    %1 = math.exp %0 : vector<32x80xf32>
    %2 = arith.truncf %1 : vector<32x80xf32> to vector<32x80xbf16>
    %c0_1 = arith.constant 0 : index
    %c0_2 = arith.constant 0 : index
    %3 = vector.load %arg2[%c0_1, %c0_2] : memref<80x513xbf16, #tpu.memory_space<vmem>>, vector<80x513xbf16>
    %cst = arith.constant dense<0.000000e+00> : vector<32x513xf32>
    %4 = tpu.matmul %2, %3, %cst {dimension_numbers = #tpu.dot_dimension_numbers<[1], [0], [0], [1], [0, 0, 1, 1], [], []>} : vector<32x80xbf16>, vector<80x513xbf16>, vector<32x513xf32> -> vector<32x513xf32>
    %5 = math.absf %4 : vector<32x513xf32>
    %c0_3 = arith.constant 0 : index
    %c0_4 = arith.constant 0 : index
    %6 = vector.load %arg3[%c0_3, %c0_4] : memref<32x513xf32, #tpu.memory_space<vmem>>, vector<32x513xf32>
    tpu.vector_store %arg3[%c0_3, %c0_4], %5 {strides = array<i32>} : memref<32x513xf32, #tpu.memory_space<vmem>>, vector<32x513xf32>,
    return
  }
  func.func @transform_0(%arg0: i32) -> (i32, i32) {
    %c0_i32 = arith.constant 0 : i32
    %c0_i32_0 = arith.constant 0 : i32
    return %arg0, %c0_i32 : i32, i32
  }
  func.func @transform_1(%arg0: i32) -> (i32, i32) {
    %c0_i32 = arith.constant 0 : i32
    %c0_i32_0 = arith.constant 0 : i32
    %c0_i32_1 = arith.constant 0 : i32
    return %c0_i32, %c0_i32_0 : i32, i32
  }
  func.func @transform_2(%arg0: i32) -> (i32, i32) {
    %c0_i32 = arith.constant 0 : i32
    %c0_i32_0 = arith.constant 0 : i32
    return %arg0, %c0_i32 : i32, i32
  }
}

</mosaic_0001>

<bundles_post_ra>
// kernel: reverse.14
= control target key start
LH: loop header
LB: loop body
LE: loop exit
PB: predicated region body
PF: predicated region fallthrough
CT: control target
= control target key end

     0   :  { %v2_v0 = vlaneseq  ;;  %s384_s0 = inlined_call_operand.vmem [shape: f32[2,16,512], index: 0, kind: input, shape index: {}]   ;;  %s385_s1 = inlined_call_operand.vmem [shape: f32[2,16,512], index: 1, kind: output, shape index: {}]  }
   0x2   :  { %v340_v1 = vsub.s32 127, %v2_v0 }
   0x4   :  { %4 = vset.pattern.permute.xlu0 %v340_v1 }
   0x5   :  { %s343_s6 = smov 0   ;;  %s345_s7 = smov 0  }
   0x6   :  { %s347_s8 = smov 0  }
   0x7 LB: > { %s263_s9 = sadd.s32 4294967295, %s328_s8   ;;  %s22_s10 = sadd.s32 1, %s324_s7  ;;  %s328_s8 = sphi %s347_s8, %s10_s8   ;;  %s324_s7 = sphi %s345_s7, %s387_s7   ;;  %s320_s6 = sphi %s343_s6, %s386_s6  }
   0x8   : > { %p23_p0 = scmp.ge.s32.totalorder %s22_s10, 4  ;;  %p265_p1 = scmp.ge.s32.totalorder %s328_s8, 4 }
   0x9   : > { %s45_s11 = sand.u32 (!%p265_p1), 1, %s328_s8   ;;  %s48_s12 = ssub.s32 (!%p265_p1), 3, %s324_s7 }
   0xa   : > { %s389_s10 = smov (%p23_p0, %s22_s10), 0  ;;  %43 = sbr.rel (%p265_p1) target bundleno = 18 (0x12), region = 16 }
   0xb   : > { %s266_s13 = sshll.u32 (!%p265_p1), %s45_s11, 5  ;;  %s267_s14 = sshll.u32 (!%p265_p1), %s48_s12, 3 }
   0xc   : > { %s56_s17 = scalar_lea.vmem (!%p265_p1), %s384_s0, %s267_s14  ;;  %s47_s18 = scalar_lea.vmem (!%p265_p1), [#allocation0], %s266_s13 }
   0xd   : > { %v90_v2 = vld [vmem:[%s56_s17] sm:$0xff] (!%p265_p1) }
   0xe   : > { %v92_v3 = vld [vmem:[%s56_s17 + $0x20] sm:$0xff] (!%p265_p1)  ;;  %91 = vst [vmem:[%s47_s18] sm:$0xff] (!%p265_p1), %v90_v2 }
   0xf   : > { %v94_v4 = vld [vmem:[%s56_s17 + $0x40] sm:$0xff] (!%p265_p1)  ;;  %93 = vst [vmem:[%s47_s18 + $0x8] sm:$0xff] (!%p265_p1), %v92_v3 }
  0x10   : > { %95 = vst [vmem:[%s47_s18 + $0x10] sm:$0xff] (!%p265_p1), %v94_v4  ;;  %v96_v5 = vld [vmem:[%s56_s17 + $0x60] sm:$0xff] (!%p265_p1) }
  0x11   : > { %97 = vst [vmem:[%s47_s18 + $0x18] sm:$0xff] %v96_v5 }
  0x12 PF: > { %p268_p2 = scmp.ge.s32.totalorder %s328_s8, 1  ;;  %p102_p3 = scmp.lt.s32.totalorder %s328_s8, 5 }
  0x14   : > { %p103_p4 = pnand %p268_p2, %p102_p3 }
  0x15   : > { %305 = vset.pattern.permute.xlu1 (!%p103_p4), %v340_v1  ;;  %s109_s19 = sand.u32 (!%p103_p4), 1, %s263_s9   ;;  %s278_s22 = sshll.u32 (!%p103_p4), %s320_s6, 3 }
  0x16   : > { %106 = sbr.rel (%p103_p4) target bundleno = 158 (0x9e), region = 54  ;;  %s269_s20 = sshll.u32 (!%p103_p4), %s109_s19, 5 }
  0x17   : > { %s111_s21 = scalar_lea.vmem (!%p103_p4), [#allocation0], %s269_s20  ;;  %s158_s25 = scalar_lea.vmem (!%p103_p4), %s385_s1, %s278_s22 }
  0x18   : > { %v273_v6 = vld [vmem:[%s111_s21 + $0x10] sm:$0xff] (!%p103_p4)  ;;  %v125_v7 = vld [vmem:[%s111_s21] sm:$0xff] (!%p103_p4)  ;;  %v275_v8 = vld [vmem:[%s111_s21 + $0x18] sm:$0xff] (!%p103_p4) }
  0x19   : > { %138 = vperm.xlu1 (!%p103_p4), %305, %v273_v6   ;;  %126 = vperm.xlu0 (!%p103_p4), %4, %v125_v7   ;;  %v271_v9 = vld [vmem:[%s111_s21 + $0x8] sm:$0xff] (!%p103_p4) }
  0x1d   : > { %144 = vperm.xlu1 %305, %v275_v8   ;;  %132 = vperm.xlu0 %4, %v271_v9  }
  0x98   : > { %v139_v10 = vpop.permute.xlu1 %138  ;;  %v127_v11 = vpop.permute.xlu0 %126 }
  0x99   : > { %197 = vst [vmem:[%s158_s25 + $0x40] sm:$0xff] %v139_v10  ;;  %193 = vst [vmem:[%s158_s25] sm:$0xff] %v127_v11 }
  0x9c   : > { %v145_v12 = vpop.permute.xlu1 %144  ;;  %v133_v13 = vpop.permute.xlu0 %132 }
  0x9d   : > { %199 = vst [vmem:[%s158_s25 + $0x60] sm:$0xff] %v145_v12  ;;  %195 = vst [vmem:[%s158_s25 + $0x20] sm:$0xff] %v133_v13 }
  0x9e PF: > { %s10_s8 = sadd.s32 1, %s328_s8   ;;  %s386_s6 = smov %s324_s7 }
  0x9f   : > { %p7_p5 = scmp.ge.s32.totalorder %s10_s8, 6   ;;  %s387_s7 = smov %s389_s10 }
  0xa1   :  { %9 = sbr.rel (!%p7_p5) target bundleno = 7 (0x7), region = 124 }

// kernel: forward.1
= control target key start
LH: loop header
LB: loop body
LE: loop exit
PB: predicated region body
PF: predicated region fallthrough
CT: control target
= control target key end

     0   :  { %v489_v1 = vmov 0   ;;  %vm186_vm0 = vcmask 654336   ;;  %vm372_vm1 = vcmask 7168   ;;  %s662_s1 = inlined_call_operand.vmem [shape: bf16[80,513], index: 1, kind: input, shape index: {}]   ;;  %s663_s0 = inlined_call_operand.vmem [shape: f32[32,80], index: 0, kind: input, shape index: {}]   ;;  %s664_s2 = inlined_call_operand.vmem [shape: f32[32,513], index: 2, kind: output, shape index: {}]  }
   0x1   :  { %v446_v0 = vld [vmem:[%s662_s1 + $0x4] ss:$20 sps:$4 sm:$0xff]   ;;  %225 = vmatprep.mubr.bf16.mxu0 %v489_v1  ;;  %278 = vmatprep.mubr.bf16.mxu1 %v489_v1  ;;  %v448_v2 = vld [vmem:[%s662_s1] ss:$20 sps:$4 sm:$0xff]   ;;  %v451_v4 = vld [vmem:[%s662_s1 + $0x28] ss:$20 sps:$4 sm:$0xff]  }
   0x2   :  { %193 = vmatprep.subr.bf16.mxu0 %v446_v0  ;;  %v449_v3 = vld [vmem:[%s662_s1 + $0x2c] ss:$20 sps:$4 sm:$0xff]   ;;  %v452_v5 = vld [vmem:[%s662_s1 + $0x54] ss:$20 sps:$4 sm:$0xff]   ;;  %v454_v8 = vld [vmem:[%s662_s1 + $0x50] ss:$20 sps:$4 sm:$0xff]  }
   0x3   :  { %194 = vmatpush1.bf16.msra.mxu0 %v448_v2  ;;  %v455_v6 = vld [vmem:[%s662_s1 + $0xc] ss:$20 sps:$4 sm:$0xff]   ;;  %v457_v7 = vld [vmem:[%s662_s1 + $0x8] ss:$20 sps:$4 sm:$0xff]   ;;  %v463_v10 = vld [vmem:[%s662_s1 + $0x30] ss:$20 sps:$4 sm:$0xff]  }
   0x4   :  { %195 = vmatprep.subr.bf16.mxu0 %v449_v3  ;;  %246 = vmatprep.subr.bf16.mxu1 %v455_v6  ;;  %v461_v9 = vld [vmem:[%s662_s1 + $0x34] ss:$20 sps:$4 sm:$0xff]   ;;  %v458_v11 = vld [vmem:[%s662_s1 + $0x7c] ss:$20 sps:$4 sm:$0xff]   ;;  %v460_v12 = vld [vmem:[%s662_s1 + $0x78] ss:$20 sps:$4 sm:$0xff]  }
   0x5   :  { %247 = vmatpush1.bf16.msra.mxu1 %v457_v7  ;;  %v467_v13 = vld [vmem:[%s662_s1 + $0x5c] ss:$20 sps:$4 sm:$0xff]   ;;  %v469_v14 = vld [vmem:[%s662_s1 + $0x58] ss:$20 sps:$4 sm:$0xff]   ;;  %v12_v15 = vld [vmem:[%s663_s0] sm:$0xff] }
   0x6   :  { %248 = vmatprep.subr.bf16.mxu1 %v461_v9  ;;  %v13_v16 = vld [vmem:[%s663_s0 + $0x8] sm:$0xff]  ;;  %v16_v17 = vmul.f32 1.442695, %v12_v15  ;;  %v464_v18 = vld [vmem:[%s662_s1 + $0xa4] ss:$20 sps:$4 sm:$0xff]   ;;  %v14_v25 = vld [vmem:[%s663_s0 + $0x10] sm:$0xff] }
   0x7   :  { %196 = vmatpush1.bf16.msra.mxu0 %v451_v4  ;;  %v18_v19 = vmul.f32 1.442695, %v13_v16  ;;  %v466_v20 = vld [vmem:[%s662_s1 + $0xa0] ss:$20 sps:$4 sm:$0xff]   ;;  %v471_v21 = vld [vmem:[%s662_s1 + $0x84] ss:$20 sps:$4 sm:$0xff]  }
   0x8   :  { %197 = vmatprep.subr.bf16.mxu0 %v452_v5  ;;  %481 = vpow2.f32 %v16_v17  ;;  %v470_v22 = vld [vmem:[%s662_s1 + $0x10] ss:$20 sps:$4 sm:$0xff]   ;;  %v473_v23 = vld [vmem:[%s662_s1 + $0x80] ss:$20 sps:$4 sm:$0xff]   ;;  %v15_v26 = vld [vmem:[%s663_s0 + $0x18] sm:$0xff] }
   0x9   :  { %249 = vmatpush1.bf16.msra.mxu1 %v463_v10  ;;  %483 = vpow2.f32 %v18_v19  ;;  %v475_v24 = vld [vmem:[%s662_s1 + $0xac] ss:$20 sps:$4 sm:$0xff]   ;;  %v20_v27 = vmul.f32 1.442695, %v14_v25  ;;  %v22_v28 = vmul.f32 1.442695, %v15_v26 }
   0xa   :  { %250 = vmatprep.subr.bf16.mxu1 %v467_v13  ;;  %v477_v29 = vld [vmem:[%s662_s1 + $0xa8] ss:$20 sps:$4 sm:$0xff]   ;;  %v474_v33 = vld [vmem:[%s662_s1 + $0x38] ss:$20 sps:$4 sm:$0xff]   ;;  %v478_v34 = vld [vmem:[%s662_s1 + $0x60] ss:$20 sps:$4 sm:$0xff]  }
   0xb   :  { %198 = vmatpush1.bf16.msra.mxu0 %v454_v8  ;;  %485 = vpow2.f32 %v20_v27  ;;  %v479_v38 = vld [vmem:[%s662_s1 + $0x88] ss:$20 sps:$4 sm:$0xff]   ;;  %v480_v39 = vld [vmem:[%s662_s1 + $0xb0] ss:$20 sps:$4 sm:$0xff]  }
   0xc   :  { %199 = vmatprep.subr.bf16.mxu0 %v458_v11  ;;  %487 = vpow2.f32 %v22_v28 }
   0xd   :  { %251 = vmatpush1.bf16.msra.mxu1 %v469_v14 }
   0xe   :  { %252 = vmatprep.subr.bf16.mxu1 %v471_v21 }
   0xf   :  { %200 = vmatpush1.bf16.msra.mxu0 %v460_v12 }
  0x10   :  { %201 = vmatprep.subr.bf16.mxu0 %v464_v18 }
  0x11   :  { %253 = vmatpush1.bf16.msra.mxu1 %v473_v23 }
  0x12   :  { %254 = vmatprep.subr.bf16.mxu1 %v475_v24  ;;  %v482_v30 = vpop.eup %481 }
  0x13   :  { %202 = vmatpush1.bf16.msra.mxu0 %v466_v20  ;;  %v484_v31 = vpop.eup %483 }
  0x14   :  { %431 = vmatprep.subr.bf16.mxu0 %v470_v22  ;;  %v24_v32 = vpack.c.bf16 %v484_v31, %v482_v30 }
  0x15   :  { %255 = vmatpush1.bf16.msra.mxu1 %v477_v29  ;;  %v486_v35 = vpop.eup %485 }
  0x16   :  { %418 = vmatmul.mubr.msk.bf16.vlgmr.msra.gmra.mrb[0].mxu0 %vm186_vm0, %v24_v32  ;;  %v488_v36 = vpop.eup %487 }
  0x17   :  { %432 = vmatpush3.bf16.msra.mxu0 %v470_v22  ;;  %235 = vmatprep.mubr.bf16.mxu0 %v489_v1  ;;  %v25_v37 = vpack.c.bf16 %v488_v36, %v486_v35 }
  0x18   :  { %420 = vmatmul.mubr.msk.bf16.vlgmr.msra.gmra.mrb[0].mxu1 %vm186_vm0, %v24_v32  ;;  %433 = vmatprep.subr.bf16.mxu0 %v474_v33 }
  0x19   :  { %288 = vmatprep.mubr.bf16.mxu1 %v489_v1 }
  0x1b   :  { %434 = vmatpush3.bf16.msra.mxu0 %v474_v33 }
  0x1c   :  { %435 = vmatprep.subr.bf16.mxu0 %v478_v34 }
  0x1e   :  { %419 = vmatmul.mubr.msk.bf16.gmra.mrb[4].mxu0 %vm186_vm0, %v25_v37 }
  0x1f   :  { %436 = vmatpush3.bf16.msra.mxu0 %v478_v34  ;;  %441 = vmatprep.mubr.msk.bf16.mxu0 %vm186_vm0, %v24_v32 }
  0x20   :  { %421 = vmatmul.mubr.msk.bf16.gmra.mrb[4].mxu1 %vm186_vm0, %v25_v37  ;;  %437 = vmatprep.subr.bf16.mxu0 %v479_v38 }
  0x23   :  { %438 = vmatpush3.bf16.msra.mxu0 %v479_v38 }
  0x24   :  { %439 = vmatprep.subr.bf16.mxu0 %v480_v39 }
  0x27   :  { %440 = vmatpush3.bf16.msra.mxu0 %v480_v39 }
  0x2a   :  { %442 = vmatmul.mubr.msk.bf16.vlgmr.msra.gmra.mrb[8].mxu0 %vm186_vm0, %v25_v37 }
  0xe9   :  { %v227_v40 = vpop.f32.mrb[0].mxu0 }
  0xea   :  { %v348_v42 = vand.u32 2147483647, %v227_v40  ;;  %v229_v43 = vpop.f32.mrb[1].mxu0 }
  0xeb   :  { %v280_v41 = vpop.f32.mrb[0].mxu1  ;;  %v349_v46 = vand.u32 2147483647, %v229_v43  ;;  %v231_v47 = vpop.f32.mrb[2].mxu0 }
  0xec   :  { %v350_v44 = vand.u32 2147483647, %v280_v41  ;;  %v282_v45 = vpop.f32.mrb[1].mxu1  ;;  %368 = vst [vmem:[%s664_s2] sm:$0xff] %v348_v42  ;;  %v353_v50 = vand.u32 2147483647, %v231_v47  ;;  %v233_v51 = vpop.f32.mrb[3].mxu0 }
  0xed   :  { %v351_v48 = vand.u32 2147483647, %v282_v45  ;;  %v284_v49 = vpop.f32.mrb[2].mxu1  ;;  %369 = vst [vmem:[%s664_s2 + $0x8] sm:$0xff] %v349_v46  ;;  %v354_v54 = vand.u32 2147483647, %v233_v51 }
  0xee   :  { %370 = vst [vmem:[%s664_s2 + $0x10] sm:$0xff] %v350_v44  ;;  %v355_v52 = vand.u32 2147483647, %v284_v49  ;;  %v286_v53 = vpop.f32.mrb[3].mxu1  ;;  %374 = vst [vmem:[%s664_s2 + $0x28] sm:$0xff] %v353_v50 }
  0xef   :  { %371 = vst [vmem:[%s664_s2 + $0x18] sm:$0xff] %v351_v48  ;;  %v356_v55 = vand.u32 2147483647, %v286_v53  ;;  %375 = vst [vmem:[%s664_s2 + $0x30] sm:$0xff] %v354_v54 }
  0xf0   :  { %376 = vst [vmem:[%s664_s2 + $0x38] sm:$0xff] %v355_v52 }
  0xf1   :  { %377 = vst [vmem:[%s664_s2 + $0x40] sm:$0xff] %v356_v55  ;;  %v237_v56 = vpop.f32.mrb[4].mxu0 }
  0xf2   :  { %v358_v58 = vand.u32 2147483647, %v237_v56  ;;  %v239_v59 = vpop.f32.mrb[5].mxu0 }
  0xf3   :  { %v290_v57 = vpop.f32.mrb[4].mxu1  ;;  %v359_v62 = vand.u32 2147483647, %v239_v59  ;;  %v241_v63 = vpop.f32.mrb[6].mxu0 }
  0xf4   :  { %v360_v60 = vand.u32 2147483647, %v290_v57  ;;  %v292_v61 = vpop.f32.mrb[5].mxu1  ;;  %379 = vst [vmem:[%s664_s2 + $0x50] sm:$0xff] %v358_v58  ;;  %v363_v2 = vand.u32 2147483647, %v241_v63 }
  0xf5   :  { %v361_v0 = vand.u32 2147483647, %v292_v61  ;;  %v294_v1 = vpop.f32.mrb[6].mxu1  ;;  %v243_v3 = vpop.f32.mrb[7].mxu0  ;;  %380 = vst [vmem:[%s664_s2 + $0x58] sm:$0xff] %v359_v62 }
  0xf6   :  { %381 = vst [vmem:[%s664_s2 + $0x60] sm:$0xff] %v360_v60  ;;  %v365_v4 = vand.u32 2147483647, %v294_v1  ;;  %v296_v5 = vpop.f32.mrb[7].mxu1  ;;  %v364_v6 = vand.u32 2147483647, %v243_v3 }
  0xf7   :  { %382 = vst [vmem:[%s664_s2 + $0x68] sm:$0xff] %v361_v0  ;;  %v366_v7 = vand.u32 2147483647, %v296_v5  ;;  %384 = vst [vmem:[%s664_s2 + $0x78] sm:$0xff] %v363_v2 }
  0xf8   :  { %386 = vst [vmem:[%s664_s2 + $0x88] sm:$0xff] %v365_v4  ;;  %385 = vst [vmem:[%s664_s2 + $0x80] sm:$0xff] %v364_v6 }
  0xf9   :  { %387 = vst [vmem:[%s664_s2 + $0x90] sm:$0xff] %v366_v7 }
  0xfd   :  { %v443_v8 = vpop.f32.mrb[8].mxu0 }
  0xfe   :  { %v362_v9 = vand.u32 2147483647, %v443_v8  ;;  %v333_v10 = vpop.f32.mrb[9].mxu0 }
  0xff   :  { %v352_v11 = vand.u32 2147483647, %v333_v10  ;;  %v444_v12 = vpop.f32.mrb[10].mxu0 }
 0x100   :  { %383 = vst.msk [vmem:[%s664_s2 + $0x70] sm:$0xff] %vm372_vm1, %v362_v9  ;;  %v367_v13 = vand.u32 2147483647, %v444_v12  ;;  %v336_v14 = vpop.f32.mrb[11].mxu0 }
 0x101   :  { %373 = vst.msk [vmem:[%s664_s2 + $0x20] sm:$0xff] %vm372_vm1, %v352_v11  ;;  %v357_v15 = vand.u32 2147483647, %v336_v14 }
 0x102   :  { %388 = vst.msk [vmem:[%s664_s2 + $0x98] sm:$0xff] %vm372_vm1, %v367_v13 }
 0x103   :  { %378 = vst.msk [vmem:[%s664_s2 + $0x48] sm:$0xff] %vm372_vm1, %v357_v15 }

</bundles_post_ra>
